<compile_context>
chip_gen: v7x
topology: tpu7x:2x2x1
jax: 0.10.0
libtpu: 0.0.40
codegen_flags: <defaults>
</compile_context>

<pallas_src>
import jax
import jax.numpy as jnp
from jax.experimental import pallas as pl
from jax.experimental.pallas import tpu as pltpu


def _round_up(x, m):
    return ((x + m - 1) // m) * m


def _bahdanau_kernel(pq_ref, mem_ref, v_ref, out_ref):
    # pq_ref  : (b_tile, dim)          processed query (already q @ Wq^T)
    # mem_ref : (b_tile, t_tile, dim)  processed memory tile (dominant HBM stream)
    # v_ref   : (1, dim)               v weight row (resident)
    # out_ref : (b_tile, t_tile)       alignment scores
    #
    # VPU add + EUP tanh + VPU mul + XLU lane-reduce; no MXU use.  Kernel is HBM-bound
    # on mem_ref, so the compute slots have slack.
    t = jnp.tanh(pq_ref[...][:, None, :] + mem_ref[...])       # (b_tile, t_tile, dim)
    score = jnp.sum(t * v_ref[...], axis=-1)                   # (b_tile, t_tile)
    out_ref[...] = score.astype(out_ref.dtype)


def bahdanau_attention(query, processed_memory, wq_weight, v_weight,
                       *, b_tile=None, t_tile=None, interpret=False):
    """query: (B, dim) or (B, 1, dim); processed_memory: (B, T, dim).

    Returns alignment: (B, T), matching BahdanauAttention.forward (bias=False linears).
    """
    if query.ndim == 3:
        query = query[:, 0, :]                      # (B, 1, dim) -> (B, dim)
    B, dim = query.shape
    _, T, _ = processed_memory.shape

    out_dtype = jnp.result_type(query.dtype, processed_memory.dtype)

    # Projection hoisted out of the kernel: tiny next to the (B, T, dim) stream, and it
    # lets both grid axes be "parallel" (no ordered scratch init).
    pq = jnp.dot(query, wq_weight.T,
                 preferred_element_type=jnp.float32).astype(out_dtype)

    itemsize = jnp.dtype(processed_memory.dtype).itemsize

    # ---- tile heuristic (no padding: last dims use the full array extent) ----------
    per_buf_budget = 4 << 20            # one pipeline buffer of processed_memory

    auto_b = b_tile is None
    if auto_b:
        # Batch tile: full batch when tiny, else a multiple of 8 sublanes.
        b_tile = B if B <= 8 else min(_round_up(B, 8), 64)

    if t_tile is None:
        if T <= 128:
            t_tile = T                  # full extent satisfies the (8, 128) rule
        else:
            T_p = _round_up(T, 128)
            # lane-dense output stores: multiple of 128; cap by the per-buffer budget
            rows_budget = max(128, ((per_buf_budget // (itemsize * dim * b_tile)) // 128) * 128)
            # keep >= ~3 T steps so double-buffering actually overlaps DMA with compute
            rows_steps = max(128, _round_up(pl.cdiv(T_p, 3), 128))
            t_tile = min(T_p, rows_budget, rows_steps)

    if auto_b:
        # For large dim, shrink the batch tile (free: we are HBM-bound) rather than the
        # lane-constrained time tile, until one mem buffer fits the budget.
        while b_tile > 8 and itemsize * b_tile * t_tile * dim > per_buf_budget:
            b_tile = max(8, b_tile // 2)

    grid = (pl.cdiv(B, b_tile), pl.cdiv(T, t_tile))

    # Explicit scoped-VMEM budget: double-buffered tiles + allowance for the rank-3
    # tanh/broadcast intermediates (worst case materialized).  Floor above v5e's 16 MiB
    # scoped default, ceiling leaves headroom under v7x's 64 MiB physical VMEM.
    mem_tile_bytes = b_tile * t_tile * dim * itemsize
    est = (2 * mem_tile_bytes                    # processed_memory double buffer
           + 2 * b_tile * t_tile * 4             # output double buffer
           + 2 * b_tile * dim * 4                # processed_query double buffer
           + 3 * b_tile * t_tile * dim * 4       # rank-3 f32 intermediates allowance
           + (1 << 20))
    vmem_limit = int(min(max(est, 16 << 20), 48 << 20))

    out = pl.pallas_call(
        _bahdanau_kernel,
        out_shape=jax.ShapeDtypeStruct((B, T), out_dtype),
        grid_spec=pltpu.PrefetchScalarGridSpec(
            num_scalar_prefetch=0,
            grid=grid,
            in_specs=[
                pl.BlockSpec((b_tile, dim), lambda b, t: (b, 0)),            # processed query
                pl.BlockSpec((b_tile, t_tile, dim), lambda b, t: (b, t, 0)),  # memory tile
                pl.BlockSpec((1, dim), lambda b, t: (0, 0)),                 # v (resident)
            ],
            out_specs=pl.BlockSpec((b_tile, t_tile), lambda b, t: (b, t)),
        ),
        compiler_params=pltpu.CompilerParams(
            # No cross-step state -> both axes independent; megacore shards either one.
            dimension_semantics=("parallel", "parallel"),
            vmem_limit_bytes=vmem_limit),
        interpret=interpret,
    )(pq, processed_memory, v_weight)

    return out


def _reference(query, processed_memory, wq_weight, v_weight):
    if query.ndim == 2:
        query = query[:, None, :]
    pq = query @ wq_weight.T                               # (B, 1, dim)
    al = jnp.tanh(pq + processed_memory) @ v_weight.T      # (B, T, 1)
    return al[..., 0]


if __name__ == "__main__":
    B, T, dim = 2, 8, 32
    key = jax.random.PRNGKey(0)
    k_q, k_m, k_wq, k_v = jax.random.split(key, 4)

    query = jax.random.normal(k_q, (B, dim), dtype=jnp.float32)
    processed_memory = jax.random.normal(k_m, (B, T, dim), dtype=jnp.float32)

    # Deterministic parameter init (nn.Linear-like uniform scale, bias=False).
    bound = 1.0 / float(dim) ** 0.5
    wq_weight = jax.random.uniform(k_wq, (dim, dim), jnp.float32, -bound, bound)
    v_weight = jax.random.uniform(k_v, (1, dim), jnp.float32, -bound, bound)

    out = bahdanau_attention(query, processed_memory, wq_weight, v_weight)
    out = jax.block_until_ready(out)

    ref = _reference(query, processed_memory, wq_weight, v_weight)
    assert out.shape == (B, T)
    assert jnp.allclose(out, ref, atol=1e-5, rtol=1e-5), "mismatch vs reference (2D query)"

    # Also exercise the (B, 1, dim) query path of the original module.
    out3 = jax.block_until_ready(
        bahdanau_attention(query[:, None, :], processed_memory, wq_weight, v_weight))
    assert jnp.allclose(out3, ref, atol=1e-5, rtol=1e-5), "mismatch vs reference (3D query)"

    print("KERNEL_OK")
</pallas_src>

<mosaic_0001>
module attributes {stable_mosaic.version = 11 : i64} {
  func.func @_bahdanau_kernel(%arg0: i32, %arg1: i32, %arg2: memref<2x32xf32, #tpu.memory_space<vmem>>, %arg3: memref<2x8x32xf32, #tpu.memory_space<vmem>>, %arg4: memref<1x32xf32, #tpu.memory_space<vmem>>, %arg5: memref<2x8xf32, #tpu.memory_space<vmem>>) attributes {dimension_semantics = [#tpu.dimension_semantics<parallel>, #tpu.dimension_semantics<parallel>], iteration_bounds = array<i64: 1, 1>, scalar_prefetch = 0 : i64, scratch_operands = 0 : i64, tpu.core_type = #tpu.core_type<tc>, window_params = [{transform_indices = @transform_0, window_bounds = array<i64: 2, 32>}, {transform_indices = @transform_1, window_bounds = array<i64: 2, 8, 32>}, {pipeline_mode = #tpu.pipeline_mode<synchronous>, transform_indices = @transform_2, window_bounds = array<i64: 1, 32>}, {transform_indices = @transform_3, window_bounds = array<i64: 2, 8>}]} {
    %c0 = arith.constant 0 : index
    %c0_0 = arith.constant 0 : index
    %0 = vector.load %arg2[%c0, %c0_0] : memref<2x32xf32, #tpu.memory_space<vmem>>, vector<2x32xf32>
    %1 = vector.shape_cast %0 : vector<2x32xf32> to vector<2x1x32xf32>
    %c0_1 = arith.constant 0 : index
    %c0_2 = arith.constant 0 : index
    %c0_3 = arith.constant 0 : index
    %2 = vector.load %arg3[%c0_1, %c0_2, %c0_3] : memref<2x8x32xf32, #tpu.memory_space<vmem>>, vector<2x8x32xf32>
    %3 = vector.broadcast %1 : vector<2x1x32xf32> to vector<2x8x32xf32>
    %4 = arith.addf %3, %2 : vector<2x8x32xf32>
    %5 = math.tanh %4 : vector<2x8x32xf32>
    %c0_4 = arith.constant 0 : index
    %c0_5 = arith.constant 0 : index
    %6 = vector.load %arg4[%c0_4, %c0_5] : memref<1x32xf32, #tpu.memory_space<vmem>>, vector<1x32xf32>
    %7 = vector.shape_cast %6 : vector<1x32xf32> to vector<1x1x32xf32>
    %8 = vector.broadcast %7 : vector<1x1x32xf32> to vector<2x8x32xf32>
    %9 = arith.mulf %5, %8 : vector<2x8x32xf32>
    %cst = arith.constant dense<0.000000e+00> : vector<2x8xf32>
    %10 = vector.multi_reduction <add>, %9, %cst [2] : vector<2x8x32xf32> to vector<2x8xf32>
    %c0_6 = arith.constant 0 : index
    %c0_7 = arith.constant 0 : index
    %11 = vector.load %arg5[%c0_6, %c0_7] : memref<2x8xf32, #tpu.memory_space<vmem>>, vector<2x8xf32>
    tpu.vector_store %arg5[%c0_6, %c0_7], %10 {strides = array<i32>} : memref<2x8xf32, #tpu.memory_space<vmem>>, vector<2x8xf32>,
    return
  }
  func.func @transform_0(%arg0: i32, %arg1: i32) -> (i32, i32) {
    %c0_i32 = arith.constant 0 : i32
    %c0_i32_0 = arith.constant 0 : i32
    return %arg0, %c0_i32 : i32, i32
  }
  func.func @transform_1(%arg0: i32, %arg1: i32) -> (i32, i32, i32) {
    %c0_i32 = arith.constant 0 : i32
    %c0_i32_0 = arith.constant 0 : i32
    return %arg0, %arg1, %c0_i32 : i32, i32, i32
  }
  func.func @transform_2(%arg0: i32, %arg1: i32) -> (i32, i32) {
    %c0_i32 = arith.constant 0 : i32
    %c0_i32_0 = arith.constant 0 : i32
    %c0_i32_1 = arith.constant 0 : i32
    return %c0_i32, %c0_i32_0 : i32, i32
  }
  func.func @transform_3(%arg0: i32, %arg1: i32) -> (i32, i32) {
    %c0_i32 = arith.constant 0 : i32
    return %arg0, %arg1 : i32, i32
  }
}

</mosaic_0001>

<bundles_post_ra>
// kernel: tpu_custom_call.1
= control target key start
LH: loop header
LB: loop body
LE: loop exit
PB: predicated region body
PF: predicated region fallthrough
CT: control target
= control target key end

     0   :  { %8 = vsyncpa [#allocation3], 0  ;;  %s286_s0 = inlined_call_operand.hbm [shape: f32[2,32], index: 0, kind: input, shape index: {}]   ;;  %s287_s1 = inlined_call_operand.hbm [shape: f32[2,8,32], index: 1, kind: input, shape index: {}]   ;;  %s288_s2 = inlined_call_operand.vmem [shape: f32[1,32], index: 2, kind: input, shape index: {}]   ;;  %s289_s3 = inlined_call_operand.hbm [shape: f32[2,8], index: 3, kind: output, shape index: {}]  }
   0x1   :  { %9 = vsyncpa [#allocation6], 0 }
   0x2   :  { %10 = vsyncpa [#allocation4], 0  ;;  %s214_s12 = smov [#allocation2]   ;;  %s215_s14 = smov [#allocation5]  }
   0x3   :  { %s17_s13 = sshll.u32 %s214_s12, 4  ;;  %s26_s15 = sshll.u32 %s215_s14, 4  ;;  %s18_s13 = int_to_ptr.vmem [resolvable:$true] %s17_s13  ;;  %s240_s15 = int_to_ptr.vmem [resolvable:$true] %s26_s15 }
   0x4   :  { %s142_s18 = scalar_lea.hbm %s286_s0, 32 }
   0x5   :  { %p143_p0 = scmp.ne.s32.totalorder %s286_s0, %s142_s18  ;;  %p146_p1 = scmp.lt.u32.totalorder %s142_s18, %s286_s0 }
   0x7   :  { %p148_p2 = pnand %p146_p1, %p143_p0 }
   0x9   :  { %151 = shalt.err (!%p148_p2)
}
   0xa   :  { %s152_s23 = scalar_lea.vmem %s18_s13, 32  ;;  %p157_p4 = scmp.lt.s32.totalorder %s18_s13, %s18_s13 }
   0xb   :  { %p153_p3 = scmp.ne.s32.totalorder %s18_s13, %s152_s23  ;;  %p158_p5 = scmp.lt.s32.totalorder %s152_s23, %s152_s23 }
   0xd   :  { %p159_p6 = por %p158_p5, %p157_p4 }
   0xf   :  { %p160_p7 = pnand %p159_p6, %p153_p3 }
  0x11   :  { %163 = shalt.err (!%p160_p7)
}
  0x12   :  { %20 = dma.hbm_to_vmem [thread:$0]  %s286_s0, 32, %s18_s13, [#allocation3]  }
  0x13   :  { %s164_s28 = scalar_lea.hbm %s287_s1, 256 }
  0x14   :  { %p165_p8 = scmp.ne.s32.totalorder %s287_s1, %s164_s28  ;;  %p168_p9 = scmp.lt.u32.totalorder %s164_s28, %s287_s1 }
  0x16   :  { %p170_p10 = pnand %p168_p9, %p165_p8 }
  0x18   :  { %173 = shalt.err (!%p170_p10)
}
  0x19   :  { %s174_s6 = scalar_lea.vmem %s240_s15, 256  ;;  %p179_p12 = scmp.lt.s32.totalorder %s240_s15, %s240_s15 }
  0x1a   :  { %p175_p11 = scmp.ne.s32.totalorder %s240_s15, %s174_s6  ;;  %p180_p13 = scmp.lt.s32.totalorder %s174_s6, %s174_s6 }
  0x1c   :  { %p181_p0 = por %p180_p13, %p179_p12 }
  0x1e   :  { %p182_p1 = pnand %p181_p0, %p175_p11 }
  0x20   :  { %185 = shalt.err (!%p182_p1)
}
  0x21   :  { %s216_s0 = smov 128   ;;  %s217_s7 = smov 8  }
  0x22   :  { %32 = dma.hbm_to_vmem [thread:$0]  %s287_s1, 256, %s240_s15, [#allocation6], %s216_s0, %s216_s0, %s217_s7  }
  0x23   :  { %208 = dma.done.wait [#allocation3], 32  }
  0x24   :  { %209 = vsyncadd [#allocation3], 4294967264 }
  0x25   :  { %210 = dma.done.wait [#allocation6], 256  }
  0x26   :  { %211 = vsyncadd [#allocation6], 4294967040  ;;  %v54_v0 = vlaneseq  ;;  %v218_v1 = vmov 1966171168   ;;  %v65_v12 = vld [vmem:[#allocation5] sm:$0xff]  ;;  %v66_v15 = vld [vmem:[#allocation5 + $0x8] sm:$0xff] }
  0x27   :  { %v52_v2 = vunpack.c.l.s4 %v218_v1  ;;  %v130_v9 = vld.sshfl [vmem:[#allocation2] sm:$0x11 pattern:$0x75316420]  ;;  %vm90_vm0 = vcmask 261120   ;;  %s219_s11 = smov [#allocation7]  }
  0x28   :  { %v55_v3 = vshrl.u32 %v54_v0, 7  ;;  %v100_v4 = vand.u32 127, %v54_v0  ;;  %v50_v11 = vcombine.high %v130_v9, %v130_v9  ;;  %v131_v19 = vld [vmem:[%s288_s2] ss:$0 sm:$0xff]  ;;  %s120_s12 = sshll.u32 %s219_s11, 4  ;;  %vm109_vm1 = vcmask 1041409   ;;  %s121_s12 = int_to_ptr.vmem [resolvable:$true] %s120_s12 }
  0x29   :  { %v53_v5 = vunpack.c.0.s8 %v52_v2  ;;  %vm112_vm2 = vcmask 58368   ;;  %s186_s2 = scalar_lea.vmem %s121_s12, 32  ;;  %p191_p3 = scmp.lt.s32.totalorder %s121_s12, %s121_s12 }
  0x2a   :  { %v103_v6 = vsub.s32 %v100_v4, %v55_v3  ;;  %v69_v8 = vsub.s32 0, %v55_v3  ;;  %p187_p2 = scmp.ne.s32.totalorder %s121_s12, %s186_s2  ;;  %p192_p4 = scmp.lt.s32.totalorder %s186_s2, %s186_s2 }
  0x2b   :  { %v56_v7 = vsub.s32 %v53_v5, %v55_v3 }
  0x2c   :  { %p193_p5 = por %p192_p4, %p191_p3 }
  0x2d   :  { %v57_v10 = vrot.slane %v130_v9, %v56_v7  ;;  %v64_v14 = vrot.slane %v50_v11, %v56_v7 }
  0x2e   :  { %p194_p6 = pnand %p193_p5, %p187_p2 }
  0x2f   :  { %v70_v13 = vrot.slane %v57_v10, %v69_v8  ;;  %v74_v17 = vrot.slane %v64_v14, %v69_v8 }
  0x31   :  { %v77_v16 = vadd.f32 %v70_v13, %v65_v12  ;;  %v78_v18 = vadd.f32 %v74_v17, %v66_v15 }
  0x33   :  { %138 = vtanh.f32 %v77_v16 }
  0x34   :  { %140 = vtanh.f32 %v78_v18 }
  0x3d   :  { %v139_v20 = vpop.eup %138 }
  0x3e   :  { %v88_v21 = vmul.f32 %v139_v20, %v131_v19  ;;  %v141_v22 = vpop.eup %140 }
  0x3f   :  { %v89_v24 = vmul.f32 %v141_v22, %v131_v19 }
  0x40   :  { %v91_v23 = vsel %vm90_vm0, %v88_v21, 0.0 }
  0x41   :  { %92 = vadd.xlane.f32.xlu0 %v91_v23  ;;  %v94_v25 = vsel %vm90_vm0, %v89_v24, 0.0 }
  0x45   :  { %95 = vadd.xlane.f32.xlu0 %v94_v25 }
  0xce   :  { %v93_v26 = vpop.xlane.xlu0 %92 }
  0xcf   :  { %v104_v28 = vrot.slane %v93_v26, %v103_v6 }
  0xd2   :  { %v96_v27 = vpop.xlane.xlu0 %95 }
  0xd3   :  { %v108_v29 = vrot.slane %v96_v27, %v103_v6 }
  0xd5   :  { %v110_v30 = vsel %vm109_vm1, %v108_v29, %v104_v28 }
  0xd6   :  { %113 = vst.msk [vmem:[#allocation7] sm:$0x3] %vm112_vm2, %v110_v30 }
  0xd7   :  { %197 = shalt.err (!%p194_p6)
}
  0xd8   :  { %s198_s15 = scalar_lea.hbm %s289_s3, 32 }
  0xd9   :  { %p199_p7 = scmp.ne.s32.totalorder %s289_s3, %s198_s15  ;;  %p202_p8 = scmp.lt.u32.totalorder %s198_s15, %s289_s3 }
  0xdb   :  { %p204_p9 = pnand %p202_p8, %p199_p7 }
  0xdd   :  { %207 = shalt.err (!%p204_p9)
}
  0xde   :  { %123 = dma.vmem_to_hbm [thread:$0]  %s121_s12, 32, %s289_s3, [#allocation4]  }
  0xdf   :  { %212 = dma.done.wait [#allocation4], 32  }
  0xe0   :  { %213 = vsyncadd [#allocation4], 4294967264 }
  0xe1   :  { %127 = vsyncpa [#allocation3], 1 }
  0xe2   :  { %128 = vsyncpa [#allocation6], 1 }
  0xe3   :  { %129 = vsyncpa [#allocation4], 1 }

</bundles_post_ra>
